<compile_context>
chip_gen: v6e
topology: v6e:2x2x1
jax: 0.10.0
libtpu: 0.0.40
codegen_flags: <defaults>
</compile_context>

<pallas_src>
import functools

import numpy as np

import jax
import jax.numpy as jnp
from jax import lax
from jax.experimental import pallas as pl
from jax.experimental.pallas import tpu as pltpu

EPS = 1e-5


def _basic_block_kernel(x_ref, w1_ref, w2_ref, b1_ref, b2_ref, out_ref):
    """One grid step processes `nb` images, fully lane-dense.

    x_ref   : (nb, H, W*Cin)          input block                       (VMEM)
    w1_ref  : (3, W*Cin,  W*Cout)     conv1 row-tap Toeplitz weights    (VMEM)
    w2_ref  : (3, W*Cout, W*Cout)     conv2 row-tap Toeplitz weights    (VMEM)
    b1/b2   : (1, W*Cout)             lane-tiled folded BN bias (f32)   (VMEM)
    out_ref : (nb, H, W*Cout)         output block
    """
    nb, H, WCin = x_ref.shape
    WCout = out_ref.shape[-1]
    f32 = jnp.float32
    wdt = w1_ref.dtype

    x3 = x_ref[...].astype(f32)                          # (nb, H, W*Cin)

    def conv3x3(src3, w_ref):
        # src3: (nb, H, WC) lane-dense slab.  The three vertical taps use the
        # slab and its +/-1-row shifted copies (zero row = SAME padding in H;
        # SAME padding in W is already baked into the Toeplitz weights).
        _, _, WC = src3.shape
        zrow = jnp.zeros((nb, 1, WC), f32)
        up = jnp.concatenate([zrow, src3[:, :H - 1, :]], axis=1)   # row h-1
        dn = jnp.concatenate([src3[:, 1:, :], zrow], axis=1)       # row h+1
        flat = lambda a: a.reshape(nb * H, WC).astype(wdt)
        acc = jnp.dot(flat(src3), w_ref[1], preferred_element_type=f32)
        acc = acc + jnp.dot(flat(up), w_ref[0], preferred_element_type=f32)
        acc = acc + jnp.dot(flat(dn), w_ref[2], preferred_element_type=f32)
        return acc                                        # (nb*H, W*Cout)

    # conv1 (scale folded into weights) -> +bias -> relu
    y = jnp.maximum(conv3x3(x3, w1_ref) + b1_ref[...], 0.0)
    # conv2 -> +bias -> +identity -> relu
    z = conv3x3(y.reshape(nb, H, WCout), w2_ref) + b2_ref[...]
    z = z + x3.reshape(nb * H, WCin)                      # Cin == Cout
    out_ref[...] = jnp.maximum(z, 0.0).reshape(nb, H, WCout).astype(
        out_ref.dtype)


def _toeplitz_weights(w_hwio, W, dtype):
    """(3,3,Cin,Cout) HWIO conv weights -> (3, W*Cin, W*Cout) row-tap
    block-Toeplitz matrices acting on lane-dense rows (SAME padding in W is
    absorbed: border output columns simply see fewer non-zero rows)."""
    _, _, Cin, Cout = w_hwio.shape
    P = np.zeros((3, W, W), np.float32)          # P[dw, w_src, w_out]
    for dw in range(3):
        for w in range(W):
            src = w + dw - 1
            if 0 <= src < W:
                P[dw, src, w] = 1.0
    t = jnp.einsum("dab,hdio->haibo", jnp.asarray(P), w_hwio)
    return t.reshape(3, W * Cin, W * Cout).astype(dtype)


def _pick_batch_block(N, H, W, C, vmem_budget=4 * 1024 * 1024):
    """Largest divisor of N whose in/out blocks fit a conservative VMEM budget
    (safe on v7x's 64 MiB VMEM as well as v5e/v6e)."""
    per_img = 2 * (H * W * C * 4) * 2            # in + out, double-buffered
    nb = max(1, min(N, vmem_budget // max(per_img, 1)))
    while N % nb:
        nb -= 1
    return nb


@functools.partial(jax.jit, static_argnames=("mxu_dtype",))
def basic_block_forward(x_nchw, params, mxu_dtype=jnp.float32):
    """BasicBlock.forward (eval mode, stride=1, downsample=None)."""
    # NCHW (PyTorch) -> NHWC, then fold channels onto the 128-lane axis.
    x = jnp.transpose(x_nchw, (0, 2, 3, 1)).astype(jnp.float32)
    N, H, W, Cin = x.shape
    w1, w2 = params["w1"], params["w2"]
    Cout = w1.shape[-1]
    assert w1.shape == (3, 3, Cin, Cout)
    assert Cin == Cout, "only the stride=1 / downsample=None path is implemented"

    # Fold eval-mode BN: scale goes into the conv weights, bias stays additive.
    s1 = params["gamma1"] * lax.rsqrt(params["var1"] + EPS)
    b1 = params["beta1"] - params["mean1"] * s1
    s2 = params["gamma2"] * lax.rsqrt(params["var2"] + EPS)
    b2 = params["beta2"] - params["mean2"] * s2
    b1t = jnp.tile(b1, W).reshape(1, W * Cout).astype(jnp.float32)
    b2t = jnp.tile(b2, W).reshape(1, W * Cout).astype(jnp.float32)

    # Row-tap Toeplitz weights (scale folded in); bf16 on v6e/v7x halves DMA
    # bytes and doubles MXU rate; all elementwise math stays f32.
    w1t = _toeplitz_weights(w1 * s1, W, mxu_dtype)       # (3, W*Cin,  W*Cout)
    w2t = _toeplitz_weights(w2 * s2, W, mxu_dtype)       # (3, W*Cout, W*Cout)

    x2d = x.reshape(N, H, W * Cin)                       # lane-dense view

    nb = _pick_batch_block(N, H, W, max(Cin, Cout))
    grid = (N // nb,)

    out2d = pl.pallas_call(
        _basic_block_kernel,
        out_shape=jax.ShapeDtypeStruct((N, H, W * Cout), x.dtype),
        grid_spec=pltpu.PrefetchScalarGridSpec(
            num_scalar_prefetch=0,
            grid=grid,
            in_specs=[
                pl.BlockSpec((nb, H, W * Cin), lambda n: (n, 0, 0)),
                pl.BlockSpec((3, W * Cin, W * Cout), lambda n: (0, 0, 0)),
                pl.BlockSpec((3, W * Cout, W * Cout), lambda n: (0, 0, 0)),
                pl.BlockSpec((1, W * Cout), lambda n: (0, 0)),
                pl.BlockSpec((1, W * Cout), lambda n: (0, 0)),
            ],
            out_specs=pl.BlockSpec((nb, H, W * Cout), lambda n: (n, 0, 0)),
        ),
        compiler_params=pltpu.CompilerParams(
            dimension_semantics=("parallel",)),          # batch is independent
    )(x2d, w1t, w2t, b1t, b2t)

    out = out2d.reshape(N, H, W, Cout)
    return jnp.transpose(out, (0, 3, 1, 2))              # NHWC -> NCHW


def reference_forward(x_nchw, params):
    """Plain-JAX reference (eval-mode BN), for correctness checking."""
    x = jnp.transpose(x_nchw, (0, 2, 3, 1)).astype(jnp.float32)
    dn = ("NHWC", "HWIO", "NHWC")
    y = lax.conv_general_dilated(x, params["w1"], (1, 1), "SAME",
                                 dimension_numbers=dn)
    y = (y - params["mean1"]) / jnp.sqrt(params["var1"] + EPS) \
        * params["gamma1"] + params["beta1"]
    y = jnp.maximum(y, 0.0)
    z = lax.conv_general_dilated(y, params["w2"], (1, 1), "SAME",
                                 dimension_numbers=dn)
    z = (z - params["mean2"]) / jnp.sqrt(params["var2"] + EPS) \
        * params["gamma2"] + params["beta2"]
    z = jnp.maximum(z + x, 0.0)
    return jnp.transpose(z, (0, 3, 1, 2))


def init_params(key, cin, cout):
    ks = jax.random.split(key, 8)
    return {
        # conv weights stored in HWIO layout (torch OIHW -> HWIO equivalent)
        "w1": 0.1 * jax.random.normal(ks[0], (3, 3, cin, cout), jnp.float32),
        "w2": 0.1 * jax.random.normal(ks[1], (3, 3, cout, cout), jnp.float32),
        "gamma1": jax.random.uniform(ks[2], (cout,), jnp.float32, 0.5, 1.5),
        "beta1": 0.1 * jax.random.normal(ks[3], (cout,), jnp.float32),
        "mean1": 0.1 * jax.random.normal(ks[4], (cout,), jnp.float32),
        "var1": jax.random.uniform(ks[5], (cout,), jnp.float32, 0.5, 1.5),
        "gamma2": jax.random.uniform(ks[6], (cout,), jnp.float32, 0.5, 1.5),
        "beta2": 0.1 * jax.random.normal(ks[7], (cout,), jnp.float32),
        "mean2": jnp.zeros((cout,), jnp.float32),
        "var2": jnp.ones((cout,), jnp.float32),
    }


if __name__ == "__main__":
    key = jax.random.PRNGKey(0)
    k_x, k_p = jax.random.split(key)

    N, C, H, W = 2, 8, 16, 16          # in_channel == out_channel, stride=1
    x = jax.random.normal(k_x, (N, C, H, W), jnp.float32)   # NCHW, like torch
    params = init_params(k_p, C, C)

    ref = reference_forward(x, params)

    # f32 MXU operands (exact path, any TPU generation).
    out = jax.block_until_ready(basic_block_forward(x, params))
    assert out.shape == (N, C, H, W)
    err = jnp.max(jnp.abs(out - ref))
    assert jnp.allclose(out, ref, rtol=1e-3, atol=1e-3), f"f32 max abs err {err}"

    # bf16 MXU operands (v6e/v7x fast path); elementwise math stays f32.
    out_bf = jax.block_until_ready(
        basic_block_forward(x, params, mxu_dtype=jnp.bfloat16))
    err_bf = jnp.max(jnp.abs(out_bf - ref))
    assert err_bf < 1e-1, f"bf16 max abs err {err_bf}"

    print("KERNEL_OK")
</pallas_src>

<mosaic_0001>
module attributes {stable_mosaic.version = 11 : i64} {
  func.func @_basic_block_kernel(%arg0: i32, %arg1: memref<2x16x128xf32, #tpu.memory_space<vmem>>, %arg2: memref<3x128x128xf32, #tpu.memory_space<vmem>>, %arg3: memref<3x128x128xf32, #tpu.memory_space<vmem>>, %arg4: memref<1x128xf32, #tpu.memory_space<vmem>>, %arg5: memref<1x128xf32, #tpu.memory_space<vmem>>, %arg6: memref<2x16x128xf32, #tpu.memory_space<vmem>>) attributes {dimension_semantics = [#tpu.dimension_semantics<parallel>], iteration_bounds = array<i64: 1>, scalar_prefetch = 0 : i64, scratch_operands = 0 : i64, tpu.core_type = #tpu.core_type<tc>, window_params = [{transform_indices = @transform_0, window_bounds = array<i64: 2, 16, 128>}, {pipeline_mode = #tpu.pipeline_mode<synchronous>, transform_indices = @transform_1, window_bounds = array<i64: 3, 128, 128>}, {pipeline_mode = #tpu.pipeline_mode<synchronous>, transform_indices = @transform_2, window_bounds = array<i64: 3, 128, 128>}, {pipeline_mode = #tpu.pipeline_mode<synchronous>, transform_indices = @transform_3, window_bounds = array<i64: 1, 128>}, {pipeline_mode = #tpu.pipeline_mode<synchronous>, transform_indices = @transform_4, window_bounds = array<i64: 1, 128>}, {transform_indices = @transform_5, window_bounds = array<i64: 2, 16, 128>}]} {
    %c0 = arith.constant 0 : index
    %c0_0 = arith.constant 0 : index
    %c0_1 = arith.constant 0 : index
    %0 = vector.load %arg1[%c0, %c0_0, %c0_1] : memref<2x16x128xf32, #tpu.memory_space<vmem>>, vector<2x16x128xf32>
    %cst = arith.constant 0.000000e+00 : f32
    %1 = vector.broadcast %cst : f32 to vector<2x1x128xf32>
    %2 = vector.extract_strided_slice %0 {offsets = [0, 0, 0], sizes = [2, 15, 128], strides = [1, 1, 1]} : vector<2x16x128xf32> to vector<2x15x128xf32>
    %3 = tpu.concatenate %1, %2 in 1 : vector<2x1x128xf32>, vector<2x15x128xf32> -> vector<2x16x128xf32>
    %4 = vector.extract_strided_slice %0 {offsets = [0, 1, 0], sizes = [2, 15, 128], strides = [1, 1, 1]} : vector<2x16x128xf32> to vector<2x15x128xf32>
    %5 = tpu.concatenate %4, %1 in 1 : vector<2x15x128xf32>, vector<2x1x128xf32> -> vector<2x16x128xf32>
    %6 = vector.shape_cast %0 : vector<2x16x128xf32> to vector<32x128xf32>
    %c1 = arith.constant 1 : index
    %c0_2 = arith.constant 0 : index
    %c0_3 = arith.constant 0 : index
    %7 = vector.load %arg2[%c1, %c0_2, %c0_3] : memref<3x128x128xf32, #tpu.memory_space<vmem>>, vector<1x128x128xf32>
    %8 = vector.shape_cast %7 : vector<1x128x128xf32> to vector<128x128xf32>
    %cst_4 = arith.constant dense<0.000000e+00> : vector<32x128xf32>
    %9 = tpu.matmul %6, %8, %cst_4 {dimension_numbers = #tpu.dot_dimension_numbers<[1], [0], [0], [1], [0, 0, 1, 1], [], []>} : vector<32x128xf32>, vector<128x128xf32>, vector<32x128xf32> -> vector<32x128xf32>
    %10 = vector.shape_cast %3 : vector<2x16x128xf32> to vector<32x128xf32>
    %c0_5 = arith.constant 0 : index
    %c0_6 = arith.constant 0 : index
    %c0_7 = arith.constant 0 : index
    %11 = vector.load %arg2[%c0_5, %c0_6, %c0_7] : memref<3x128x128xf32, #tpu.memory_space<vmem>>, vector<1x128x128xf32>
    %12 = vector.shape_cast %11 : vector<1x128x128xf32> to vector<128x128xf32>
    %cst_8 = arith.constant dense<0.000000e+00> : vector<32x128xf32>
    %13 = tpu.matmul %10, %12, %cst_8 {dimension_numbers = #tpu.dot_dimension_numbers<[1], [0], [0], [1], [0, 0, 1, 1], [], []>} : vector<32x128xf32>, vector<128x128xf32>, vector<32x128xf32> -> vector<32x128xf32>
    %14 = arith.addf %9, %13 : vector<32x128xf32>
    %15 = vector.shape_cast %5 : vector<2x16x128xf32> to vector<32x128xf32>
    %c2 = arith.constant 2 : index
    %c0_9 = arith.constant 0 : index
    %c0_10 = arith.constant 0 : index
    %16 = vector.load %arg2[%c2, %c0_9, %c0_10] : memref<3x128x128xf32, #tpu.memory_space<vmem>>, vector<1x128x128xf32>
    %17 = vector.shape_cast %16 : vector<1x128x128xf32> to vector<128x128xf32>
    %cst_11 = arith.constant dense<0.000000e+00> : vector<32x128xf32>
    %18 = tpu.matmul %15, %17, %cst_11 {dimension_numbers = #tpu.dot_dimension_numbers<[1], [0], [0], [1], [0, 0, 1, 1], [], []>} : vector<32x128xf32>, vector<128x128xf32>, vector<32x128xf32> -> vector<32x128xf32>
    %19 = arith.addf %14, %18 : vector<32x128xf32>
    %c0_12 = arith.constant 0 : index
    %c0_13 = arith.constant 0 : index
    %20 = vector.load %arg4[%c0_12, %c0_13] : memref<1x128xf32, #tpu.memory_space<vmem>>, vector<1x128xf32>
    %21 = vector.broadcast %20 : vector<1x128xf32> to vector<32x128xf32>
    %22 = arith.addf %19, %21 : vector<32x128xf32>
    %cst_14 = arith.constant 0.000000e+00 : f32
    %23 = vector.broadcast %cst_14 : f32 to vector<32x128xf32>
    %24 = arith.maximumf %22, %23 : vector<32x128xf32>
    %25 = vector.shape_cast %24 : vector<32x128xf32> to vector<2x16x128xf32>
    %cst_15 = arith.constant 0.000000e+00 : f32
    %26 = vector.broadcast %cst_15 : f32 to vector<2x1x128xf32>
    %27 = vector.extract_strided_slice %25 {offsets = [0, 0, 0], sizes = [2, 15, 128], strides = [1, 1, 1]} : vector<2x16x128xf32> to vector<2x15x128xf32>
    %28 = tpu.concatenate %26, %27 in 1 : vector<2x1x128xf32>, vector<2x15x128xf32> -> vector<2x16x128xf32>
    %29 = vector.extract_strided_slice %25 {offsets = [0, 1, 0], sizes = [2, 15, 128], strides = [1, 1, 1]} : vector<2x16x128xf32> to vector<2x15x128xf32>
    %30 = tpu.concatenate %29, %26 in 1 : vector<2x15x128xf32>, vector<2x1x128xf32> -> vector<2x16x128xf32>
    %31 = vector.shape_cast %25 : vector<2x16x128xf32> to vector<32x128xf32>
    %c1_16 = arith.constant 1 : index
    %c0_17 = arith.constant 0 : index
    %c0_18 = arith.constant 0 : index
    %32 = vector.load %arg3[%c1_16, %c0_17, %c0_18] : memref<3x128x128xf32, #tpu.memory_space<vmem>>, vector<1x128x128xf32>
    %33 = vector.shape_cast %32 : vector<1x128x128xf32> to vector<128x128xf32>
    %cst_19 = arith.constant dense<0.000000e+00> : vector<32x128xf32>
    %34 = tpu.matmul %31, %33, %cst_19 {dimension_numbers = #tpu.dot_dimension_numbers<[1], [0], [0], [1], [0, 0, 1, 1], [], []>} : vector<32x128xf32>, vector<128x128xf32>, vector<32x128xf32> -> vector<32x128xf32>
    %35 = vector.shape_cast %28 : vector<2x16x128xf32> to vector<32x128xf32>
    %c0_20 = arith.constant 0 : index
    %c0_21 = arith.constant 0 : index
    %c0_22 = arith.constant 0 : index
    %36 = vector.load %arg3[%c0_20, %c0_21, %c0_22] : memref<3x128x128xf32, #tpu.memory_space<vmem>>, vector<1x128x128xf32>
    %37 = vector.shape_cast %36 : vector<1x128x128xf32> to vector<128x128xf32>
    %cst_23 = arith.constant dense<0.000000e+00> : vector<32x128xf32>
    %38 = tpu.matmul %35, %37, %cst_23 {dimension_numbers = #tpu.dot_dimension_numbers<[1], [0], [0], [1], [0, 0, 1, 1], [], []>} : vector<32x128xf32>, vector<128x128xf32>, vector<32x128xf32> -> vector<32x128xf32>
    %39 = arith.addf %34, %38 : vector<32x128xf32>
    %40 = vector.shape_cast %30 : vector<2x16x128xf32> to vector<32x128xf32>
    %c2_24 = arith.constant 2 : index
    %c0_25 = arith.constant 0 : index
    %c0_26 = arith.constant 0 : index
    %41 = vector.load %arg3[%c2_24, %c0_25, %c0_26] : memref<3x128x128xf32, #tpu.memory_space<vmem>>, vector<1x128x128xf32>
    %42 = vector.shape_cast %41 : vector<1x128x128xf32> to vector<128x128xf32>
    %cst_27 = arith.constant dense<0.000000e+00> : vector<32x128xf32>
    %43 = tpu.matmul %40, %42, %cst_27 {dimension_numbers = #tpu.dot_dimension_numbers<[1], [0], [0], [1], [0, 0, 1, 1], [], []>} : vector<32x128xf32>, vector<128x128xf32>, vector<32x128xf32> -> vector<32x128xf32>
    %44 = arith.addf %39, %43 : vector<32x128xf32>
    %c0_28 = arith.constant 0 : index
    %c0_29 = arith.constant 0 : index
    %45 = vector.load %arg5[%c0_28, %c0_29] : memref<1x128xf32, #tpu.memory_space<vmem>>, vector<1x128xf32>
    %46 = vector.broadcast %45 : vector<1x128xf32> to vector<32x128xf32>
    %47 = arith.addf %44, %46 : vector<32x128xf32>
    %48 = vector.shape_cast %0 : vector<2x16x128xf32> to vector<32x128xf32>
    %49 = arith.addf %47, %48 : vector<32x128xf32>
    %cst_30 = arith.constant 0.000000e+00 : f32
    %50 = vector.broadcast %cst_30 : f32 to vector<32x128xf32>
    %51 = arith.maximumf %49, %50 : vector<32x128xf32>
    %52 = vector.shape_cast %51 : vector<32x128xf32> to vector<2x16x128xf32>
    %c0_31 = arith.constant 0 : index
    %c0_32 = arith.constant 0 : index
    %c0_33 = arith.constant 0 : index
    %53 = vector.load %arg6[%c0_31, %c0_32, %c0_33] : memref<2x16x128xf32, #tpu.memory_space<vmem>>, vector<2x16x128xf32>
    tpu.vector_store %arg6[%c0_31, %c0_32, %c0_33], %52 {strides = array<i32>} : memref<2x16x128xf32, #tpu.memory_space<vmem>>, vector<2x16x128xf32>,
    return
  }
  func.func @transform_0(%arg0: i32) -> (i32, i32, i32) {
    %c0_i32 = arith.constant 0 : i32
    %c0_i32_0 = arith.constant 0 : i32
    %c0_i32_1 = arith.constant 0 : i32
    return %arg0, %c0_i32, %c0_i32_0 : i32, i32, i32
  }
  func.func @transform_1(%arg0: i32) -> (i32, i32, i32) {
    %c0_i32 = arith.constant 0 : i32
    %c0_i32_0 = arith.constant 0 : i32
    %c0_i32_1 = arith.constant 0 : i32
    %c0_i32_2 = arith.constant 0 : i32
    return %c0_i32, %c0_i32_0, %c0_i32_1 : i32, i32, i32
  }
  func.func @transform_2(%arg0: i32) -> (i32, i32, i32) {
    %c0_i32 = arith.constant 0 : i32
    %c0_i32_0 = arith.constant 0 : i32
    %c0_i32_1 = arith.constant 0 : i32
    %c0_i32_2 = arith.constant 0 : i32
    return %c0_i32, %c0_i32_0, %c0_i32_1 : i32, i32, i32
  }
  func.func @transform_3(%arg0: i32) -> (i32, i32) {
    %c0_i32 = arith.constant 0 : i32
    %c0_i32_0 = arith.constant 0 : i32
    %c0_i32_1 = arith.constant 0 : i32
    return %c0_i32, %c0_i32_0 : i32, i32
  }
  func.func @transform_4(%arg0: i32) -> (i32, i32) {
    %c0_i32 = arith.constant 0 : i32
    %c0_i32_0 = arith.constant 0 : i32
    %c0_i32_1 = arith.constant 0 : i32
    return %c0_i32, %c0_i32_0 : i32, i32
  }
  func.func @transform_5(%arg0: i32) -> (i32, i32, i32) {
    %c0_i32 = arith.constant 0 : i32
    %c0_i32_0 = arith.constant 0 : i32
    %c0_i32_1 = arith.constant 0 : i32
    return %arg0, %c0_i32, %c0_i32_0 : i32, i32, i32
  }
}

</mosaic_0001>

<bundles_post_ra>
// kernel: tile.13
= control target key start
LH: loop header
LB: loop body
LE: loop exit
PB: predicated region body
PF: predicated region fallthrough
CT: control target
= control target key end

     0   :  { %s28_s0 = inlined_call_operand.vmem [shape: f32[8], index: 0, kind: input, shape index: {}]   ;;  %s29_s1 = inlined_call_operand.vmem [shape: f32[16,8], index: 1, kind: output, shape index: {}]  }
   0x1   :  { %v4_v0 = vld [vmem:[%s28_s0] ss:$0 sm:$0xff] }
   0x2   :  { %5 = vst [vmem:[%s29_s1] sm:$0xff] %v4_v0  ;;  %8 = vst [vmem:[%s29_s1 + $0x8] sm:$0xff] %v4_v0 }

// kernel: tile.14
= control target key start
LH: loop header
LB: loop body
LE: loop exit
PB: predicated region body
PF: predicated region fallthrough
CT: control target
= control target key end

     0   :  { %s133_s10 = smov 120   ;;  %s134_s11 = smov 104   ;;  %vm3_vm0 = vcmask 64512   ;;  %vm9_vm1 = vcmask 1048512   ;;  %vm15_vm2 = vcmask 982912   ;;  %vm21_vm3 = vcmask 917312   ;;  %s209_s0 = inlined_call_operand.vmem [shape: f32[16,8], index: 0, kind: input, shape index: {}]   ;;  %s210_s1 = inlined_call_operand.vmem [shape: f32[1,128], index: 1, kind: output, shape index: {}]  }
   0x1   :  { %v103_v0 = vld [vmem:[%s209_s0 + $0xf] sm:$0x1]   ;;  %v105_v1 = vld [vmem:[%s209_s0 + $0xd] sm:$0x1]   ;;  %v104_v2 = vld [vmem:[%s209_s0 + $0xe] sm:$0x1]  }
   0x2   :  { %7 = vrot.lane.b32.xlu0 %v103_v0, %s133_s10  ;;  %19 = vrot.lane.b32.xlu1 %v105_v1, %s134_s11  ;;  %v106_v3 = vld [vmem:[%s209_s0 + $0xc] sm:$0x1]   ;;  %s135_s16 = smov 112   ;;  %s136_s17 = smov 96   ;;  %v107_v4 = vld [vmem:[%s209_s0 + $0xb] sm:$0x1]  }
   0x3   :  { %v108_v5 = vld [vmem:[%s209_s0 + $0xa] sm:$0x1]   ;;  %v2_v6 = vld [vmem:[%s209_s0] sm:$0x1]   ;;  %s137_s24 = smov 88   ;;  %s138_s25 = smov 80  }
   0x4   :  { %4 = vst.msk [vmem:[#allocation0] sm:$0x1] %vm3_vm0, %v2_v6   ;;  %v109_v7 = vld [vmem:[%s209_s0 + $0x9] sm:$0x1]   ;;  %v110_v8 = vld [vmem:[%s209_s0 + $0x8] sm:$0x1]  }
   0x5   :  { %s139_s30 = smov 72   ;;  %s140_s2 = smov 64   ;;  %v111_v9 = vld [vmem:[%s209_s0 + $0x7] sm:$0x1]   ;;  %v112_v10 = vld [vmem:[%s209_s0 + $0x6] sm:$0x1]  }
   0x6   :  { %13 = vrot.lane.b32.xlu0 %v104_v2, %s135_s16  ;;  %25 = vrot.lane.b32.xlu1 %v106_v3, %s136_s17  ;;  %s141_s7 = smov 56   ;;  %s142_s8 = smov 48   ;;  %v113_v11 = vld [vmem:[%s209_s0 + $0x5] sm:$0x1]   ;;  %v114_v12 = vld [vmem:[%s209_s0 + $0x4] sm:$0x1]  }
   0x7   :  { %s143_s13 = smov 40   ;;  %s144_s14 = smov 32   ;;  %v115_v13 = vld [vmem:[%s209_s0 + $0x3] sm:$0x1]   ;;  %v116_v14 = vld [vmem:[%s209_s0 + $0x2] sm:$0x1]  }
   0x8   :  { %s145_s19 = smov 24   ;;  %s146_s20 = smov 16   ;;  %v117_v15 = vld [vmem:[%s209_s0 + $0x1] sm:$0x1]   ;;  %vm27_vm4 = vcmask 851712   ;;  %vm33_vm5 = vcmask 786112  }
   0x9   :  { %s147_s0 = smov 8   ;;  %vm39_vm6 = vcmask 720512   ;;  %vm45_vm7 = vcmask 654912   ;;  %vm51_vm8 = vcmask 589312   ;;  %vm57_vm9 = vcmask 523712  }
   0xa   :  { %31 = vrot.lane.b32.xlu0 %v107_v4, %s137_s24  ;;  %37 = vrot.lane.b32.xlu1 %v108_v5, %s138_s25  ;;  %vm63_vm10 = vcmask 458112   ;;  %vm69_vm11 = vcmask 392512   ;;  %vm75_vm12 = vcmask 326912   ;;  %vm81_vm13 = vcmask 261312  }
   0xb   :  { %vm87_vm14 = vcmask 195712   ;;  %vm93_vm15 = vcmask 130112  }
   0xe   :  { %43 = vrot.lane.b32.xlu0 %v109_v7, %s139_s30  ;;  %49 = vrot.lane.b32.xlu1 %v110_v8, %s140_s2 }
  0x12   :  { %55 = vrot.lane.b32.xlu0 %v111_v9, %s141_s7  ;;  %61 = vrot.lane.b32.xlu1 %v112_v10, %s142_s8 }
  0x16   :  { %67 = vrot.lane.b32.xlu0 %v113_v11, %s143_s13  ;;  %73 = vrot.lane.b32.xlu1 %v114_v12, %s144_s14 }
  0x1a   :  { %79 = vrot.lane.b32.xlu0 %v115_v13, %s145_s19  ;;  %85 = vrot.lane.b32.xlu1 %v116_v14, %s146_s20 }
  0x1e   :  { %91 = vrot.lane.b32.xlu0 %v117_v15, %s147_s0 }
  0x74   :  { %v8_v16 = vpop.permute.xlu0 %7   ;;  %v20_v17 = vpop.permute.xlu1 %19  }
  0x75   :  { %10 = vst.msk [vmem:[#allocation0] sm:$0x1] %vm9_vm1, %v8_v16  }
  0x78   :  { %v14_v18 = vpop.permute.xlu0 %13   ;;  %v26_v19 = vpop.permute.xlu1 %25  }
  0x79   :  { %16 = vst.msk [vmem:[#allocation0] sm:$0x1] %vm15_vm2, %v14_v18  }
  0x7a   :  { %22 = vst.msk [vmem:[#allocation0] sm:$0x1] %vm21_vm3, %v20_v17  }
  0x7b   :  { %28 = vst.msk [vmem:[#allocation0] sm:$0x1] %vm27_vm4, %v26_v19  }
  0x7c   :  { %v32_v20 = vpop.permute.xlu0 %31   ;;  %v38_v21 = vpop.permute.xlu1 %37  }
  0x7d   :  { %34 = vst.msk [vmem:[#allocation0] sm:$0x1] %vm33_vm5, %v32_v20  }
  0x7e   :  { %40 = vst.msk [vmem:[#allocation0] sm:$0x1] %vm39_vm6, %v38_v21  }
  0x80   :  { %v44_v22 = vpop.permute.xlu0 %43   ;;  %v50_v23 = vpop.permute.xlu1 %49  }
  0x81   :  { %46 = vst.msk [vmem:[#allocation0] sm:$0x1] %vm45_vm7, %v44_v22  }
  0x82   :  { %52 = vst.msk [vmem:[#allocation0] sm:$0x1] %vm51_vm8, %v50_v23  }
  0x84   :  { %v56_v24 = vpop.permute.xlu0 %55   ;;  %v62_v25 = vpop.permute.xlu1 %61  }
  0x85   :  { %58 = vst.msk [vmem:[#allocation0] sm:$0x1] %vm57_vm9, %v56_v24  }
  0x86   :  { %64 = vst.msk [vmem:[#allocation0] sm:$0x1] %vm63_vm10, %v62_v25  }
  0x88   :  { %v68_v26 = vpop.permute.xlu0 %67   ;;  %v74_v27 = vpop.permute.xlu1 %73  }
  0x89   :  { %70 = vst.msk [vmem:[#allocation0] sm:$0x1] %vm69_vm11, %v68_v26  }
  0x8a   :  { %76 = vst.msk [vmem:[#allocation0] sm:$0x1] %vm75_vm12, %v74_v27  }
  0x8c   :  { %v80_v28 = vpop.permute.xlu0 %79   ;;  %v86_v29 = vpop.permute.xlu1 %85  }
  0x8d   :  { %82 = vst.msk [vmem:[#allocation0] sm:$0x1] %vm81_vm13, %v80_v28  }
  0x8e   :  { %88 = vst.msk [vmem:[#allocation0] sm:$0x1] %vm87_vm14, %v86_v29  }
  0x90   :  { %v92_v30 = vpop.permute.xlu0 %91  }
  0x91   :  { %94 = vst.msk [vmem:[#allocation0] sm:$0x1] %vm93_vm15, %v92_v30  }
  0x98   :  { %v99_v31 = vld [vmem:[#allocation0] sm:$0x1] }
  0x99   :  { %102 = vst [vmem:[%s210_s1] sm:$0x1] %v99_v31 }

// kernel: basic_block_forward.1
= control target key start
LH: loop header
LB: loop body
LE: loop exit
PB: predicated region body
PF: predicated region fallthrough
CT: control target
= control target key end

     0   :  { %vm28_vm0 = vcmask 1040384   ;;  %vm41_vm2 = vcmask 1046528   ;;  %s1580_s1 = inlined_call_operand.vmem [shape: f32[3,128,128], index: 1, kind: input, shape index: {}]   ;;  %s1581_s0 = inlined_call_operand.vmem [shape: f32[2,16,128], index: 0, kind: input, shape index: {}]   ;;  %s1582_s2 = inlined_call_operand.vmem [shape: f32[3,128,128], index: 2, kind: input, shape index: {}]   ;;  %s1583_s3 = inlined_call_operand.vmem [shape: f32[1,128], index: 3, kind: input, shape index: {}]   ;;  %s1584_s4 = inlined_call_operand.vmem [shape: f32[1,128], index: 4, kind: input, shape index: {}]   ;;  %s1585_s5 = inlined_call_operand.vmem [shape: f32[2,16,128], index: 5, kind: output, shape index: {}]  }
   0x1   :  { %v86_v0 = vld [vmem:[%s1580_s1 + $0x78] sm:$0xff]  ;;  %v85_v2 = vld [vmem:[%s1580_s1 + $0x70] sm:$0xff]  ;;  %v84_v4 = vld [vmem:[%s1580_s1 + $0x68] sm:$0xff] }
   0x2   :  { %v757_v1 = vld [vmem:[%s1580_s1 + $0xf8] sm:$0xff]  ;;  %940 = vmatprep.subr.mxu0 %v86_v0  ;;  %v756_v3 = vld [vmem:[%s1580_s1 + $0xf0] sm:$0xff]  ;;  %v755_v5 = vld [vmem:[%s1580_s1 + $0xe8] sm:$0xff] }
   0x3   :  { %978 = vmatprep.subr.mxu1 %v757_v1  ;;  %941 = vmatpush3.msra.mxu0 %v86_v0  ;;  %v83_v6 = vld [vmem:[%s1580_s1 + $0x60] sm:$0xff]  ;;  %v82_v8 = vld [vmem:[%s1580_s1 + $0x58] sm:$0xff]  ;;  %v81_v10 = vld [vmem:[%s1580_s1 + $0x50] sm:$0xff] }
   0x4   :  { %979 = vmatpush3.msra.mxu1 %v757_v1  ;;  %942 = vmatprep.subr.mxu0 %v85_v2  ;;  %v754_v7 = vld [vmem:[%s1580_s1 + $0xe0] sm:$0xff]  ;;  %v753_v9 = vld [vmem:[%s1580_s1 + $0xd8] sm:$0xff]  ;;  %v752_v11 = vld [vmem:[%s1580_s1 + $0xd0] sm:$0xff] }
   0x5   :  { %980 = vmatprep.subr.mxu1 %v756_v3  ;;  %943 = vmatpush3.msra.mxu0 %v85_v2  ;;  %v80_v12 = vld [vmem:[%s1580_s1 + $0x48] sm:$0xff]  ;;  %v79_v14 = vld [vmem:[%s1580_s1 + $0x40] sm:$0xff]  ;;  %v78_v16 = vld [vmem:[%s1580_s1 + $0x38] sm:$0xff] }
   0x6   :  { %981 = vmatpush3.msra.mxu1 %v756_v3  ;;  %944 = vmatprep.subr.mxu0 %v84_v4  ;;  %v751_v13 = vld [vmem:[%s1580_s1 + $0xc8] sm:$0xff]  ;;  %v750_v15 = vld [vmem:[%s1580_s1 + $0xc0] sm:$0xff]  ;;  %v749_v17 = vld [vmem:[%s1580_s1 + $0xb8] sm:$0xff] }
   0x7   :  { %982 = vmatprep.subr.mxu1 %v755_v5  ;;  %945 = vmatpush3.msra.mxu0 %v84_v4  ;;  %v77_v18 = vld [vmem:[%s1580_s1 + $0x30] sm:$0xff]  ;;  %v76_v20 = vld [vmem:[%s1580_s1 + $0x28] sm:$0xff]  ;;  %v75_v22 = vld [vmem:[%s1580_s1 + $0x20] sm:$0xff] }
   0x8   :  { %983 = vmatpush3.msra.mxu1 %v755_v5  ;;  %946 = vmatprep.subr.mxu0 %v83_v6  ;;  %v748_v19 = vld [vmem:[%s1580_s1 + $0xb0] sm:$0xff]  ;;  %v747_v21 = vld [vmem:[%s1580_s1 + $0xa8] sm:$0xff]  ;;  %v746_v23 = vld [vmem:[%s1580_s1 + $0xa0] sm:$0xff] }
   0x9   :  { %984 = vmatprep.subr.mxu1 %v754_v7  ;;  %947 = vmatpush3.msra.mxu0 %v83_v6  ;;  %v74_v24 = vld [vmem:[%s1580_s1 + $0x18] sm:$0xff]  ;;  %v73_v26 = vld [vmem:[%s1580_s1 + $0x10] sm:$0xff]  ;;  %v1285_v28 = vld [vmem:[%s1581_s0] sm:$0xff] }
   0xa   :  { %985 = vmatpush3.msra.mxu1 %v754_v7  ;;  %948 = vmatprep.subr.mxu0 %v82_v8  ;;  %v745_v25 = vld [vmem:[%s1580_s1 + $0x98] sm:$0xff]  ;;  %v744_v27 = vld [vmem:[%s1580_s1 + $0x90] sm:$0xff]  ;;  %v1290_v29 = vld [vmem:[%s1581_s0 + $0x8] sm:$0xff]  ;;  %v29_v32 = vrot.slane %v1285_v28, 7  ;;  %v42_v43 = vrot.slane %v1285_v28, 1 }
   0xb   :  { %986 = vmatprep.subr.mxu1 %v753_v9  ;;  %949 = vmatpush3.msra.mxu0 %v82_v8  ;;  %v72_v30 = vld [vmem:[%s1580_s1 + $0x8] sm:$0xff]  ;;  %v30_v33 = vrot.slane %v1290_v29, 7  ;;  %v71_v34 = vld [vmem:[%s1580_s1] sm:$0xff]  ;;  %v1309_v36 = vld [vmem:[%s1581_s0 + $0x10] sm:$0xff]  ;;  %v43_v44 = vrot.slane %v1290_v29, 1 }
   0xc   :  { %987 = vmatpush3.msra.mxu1 %v753_v9  ;;  %950 = vmatprep.subr.mxu0 %v81_v10  ;;  %v743_v31 = vld [vmem:[%s1580_s1 + $0x88] sm:$0xff]  ;;  %v742_v35 = vld [vmem:[%s1580_s1 + $0x80] sm:$0xff]  ;;  %vm1312_vm1 = vmneg %vm28_vm0  ;;  %v32_v40 = vrot.slane %v1309_v36, 7  ;;  %v45_v61 = vrot.slane %v1309_v36, 1 }
   0xd   :  { %988 = vmatprep.subr.mxu1 %v752_v11  ;;  %951 = vmatpush3.msra.mxu0 %v81_v10  ;;  %v1319_v38 = vld [vmem:[%s1581_s0 + $0x18] sm:$0xff]  ;;  %v31_v39 = vsel %vm28_vm0, %v29_v32, %v30_v33  ;;  %v776_v45 = vld [vmem:[%s1580_s1 + $0x170] sm:$0xff]  ;;  %v775_v46 = vld [vmem:[%s1580_s1 + $0x168] sm:$0xff]  ;;  %v44_v48 = vsel %vm41_vm2, %v42_v43, %v43_v44 }
   0xe   :  { %989 = vmatpush3.msra.mxu1 %v752_v11  ;;  %952 = vmatprep.subr.mxu0 %v80_v12  ;;  %v777_v41 = vld [vmem:[%s1580_s1 + $0x178] sm:$0xff]  ;;  %v33_v42 = vrot.slane %v1319_v38, 7  ;;  %v774_v49 = vld [vmem:[%s1580_s1 + $0x160] sm:$0xff]  ;;  %v772_v51 = vld [vmem:[%s1580_s1 + $0x150] sm:$0xff]  ;;  %v46_v62 = vrot.slane %v1319_v38, 1 }
   0xf   :  { %990 = vmatprep.subr.mxu1 %v751_v13  ;;  %953 = vmatpush3.msra.mxu0 %v80_v12  ;;  %v773_v50 = vld [vmem:[%s1580_s1 + $0x158] sm:$0xff]  ;;  %v771_v52 = vld [vmem:[%s1580_s1 + $0x148] sm:$0xff]  ;;  %v770_v53 = vld [vmem:[%s1580_s1 + $0x140] sm:$0xff] }
  0x10   :  { %991 = vmatpush3.msra.mxu1 %v751_v13  ;;  %954 = vmatprep.subr.mxu0 %v79_v14  ;;  %v34_v47 = vsel %vm28_vm0, %v32_v40, %v33_v42  ;;  %v769_v54 = vld [vmem:[%s1580_s1 + $0x138] sm:$0xff]  ;;  %v768_v55 = vld [vmem:[%s1580_s1 + $0x130] sm:$0xff]  ;;  %v767_v56 = vld [vmem:[%s1580_s1 + $0x128] sm:$0xff]  ;;  %v47_v0 = vsel %vm41_vm2, %v45_v61, %v46_v62 }
  0x11   :  { %992 = vmatprep.subr.mxu1 %v750_v15  ;;  %955 = vmatpush3.msra.mxu0 %v79_v14  ;;  %v766_v57 = vld [vmem:[%s1580_s1 + $0x120] sm:$0xff]  ;;  %v765_v58 = vld [vmem:[%s1580_s1 + $0x118] sm:$0xff]  ;;  %v764_v59 = vld [vmem:[%s1580_s1 + $0x110] sm:$0xff] }
  0x12   :  { %993 = vmatpush3.msra.mxu1 %v750_v15  ;;  %956 = vmatprep.subr.mxu0 %v78_v16  ;;  %v763_v60 = vld [vmem:[%s1580_s1 + $0x108] sm:$0xff]  ;;  %v762_v63 = vld [vmem:[%s1580_s1 + $0x100] sm:$0xff]  ;;  %v796_v1 = vld [vmem:[%s1582_s2 + $0xf8] sm:$0xff] }
  0x13   :  { %994 = vmatprep.subr.mxu1 %v749_v17  ;;  %957 = vmatpush3.msra.mxu0 %v78_v16  ;;  %v438_v2 = vld [vmem:[%s1582_s2 + $0x78] sm:$0xff]  ;;  %v795_v3 = vld [vmem:[%s1582_s2 + $0xf0] sm:$0xff]  ;;  %v794_v5 = vld [vmem:[%s1582_s2 + $0xe8] sm:$0xff] }
  0x14   :  { %995 = vmatpush3.msra.mxu1 %v749_v17  ;;  %958 = vmatprep.subr.mxu0 %v77_v18  ;;  %v437_v4 = vld [vmem:[%s1582_s2 + $0x70] sm:$0xff]  ;;  %v436_v6 = vld [vmem:[%s1582_s2 + $0x68] sm:$0xff]  ;;  %v793_v7 = vld [vmem:[%s1582_s2 + $0xe0] sm:$0xff] }
  0x15   :  { %996 = vmatprep.subr.mxu1 %v748_v19  ;;  %959 = vmatpush3.msra.mxu0 %v77_v18  ;;  %v435_v8 = vld [vmem:[%s1582_s2 + $0x60] sm:$0xff]  ;;  %v792_v9 = vld [vmem:[%s1582_s2 + $0xd8] sm:$0xff]  ;;  %v791_v11 = vld [vmem:[%s1582_s2 + $0xd0] sm:$0xff] }
  0x16   :  { %997 = vmatpush3.msra.mxu1 %v748_v19  ;;  %960 = vmatprep.subr.mxu0 %v76_v20  ;;  %v434_v10 = vld [vmem:[%s1582_s2 + $0x58] sm:$0xff]  ;;  %v433_v12 = vld [vmem:[%s1582_s2 + $0x50] sm:$0xff]  ;;  %v790_v13 = vld [vmem:[%s1582_s2 + $0xc8] sm:$0xff] }
  0x17   :  { %998 = vmatprep.subr.mxu1 %v747_v21  ;;  %961 = vmatpush3.msra.mxu0 %v76_v20  ;;  %v432_v14 = vld [vmem:[%s1582_s2 + $0x48] sm:$0xff]  ;;  %v789_v15 = vld [vmem:[%s1582_s2 + $0xc0] sm:$0xff]  ;;  %v788_v17 = vld [vmem:[%s1582_s2 + $0xb8] sm:$0xff] }
  0x18   :  { %999 = vmatpush3.msra.mxu1 %v747_v21  ;;  %962 = vmatprep.subr.mxu0 %v75_v22  ;;  %v431_v16 = vld [vmem:[%s1582_s2 + $0x40] sm:$0xff]  ;;  %v430_v18 = vld [vmem:[%s1582_s2 + $0x38] sm:$0xff]  ;;  %v787_v19 = vld [vmem:[%s1582_s2 + $0xb0] sm:$0xff] }
  0x19   :  { %1000 = vmatprep.subr.mxu1 %v746_v23  ;;  %963 = vmatpush3.msra.mxu0 %v75_v22  ;;  %v429_v20 = vld [vmem:[%s1582_s2 + $0x30] sm:$0xff]  ;;  %v786_v21 = vld [vmem:[%s1582_s2 + $0xa8] sm:$0xff]  ;;  %v781_v33 = vld [vmem:[%s1582_s2 + $0x80] sm:$0xff] }
  0x1a   :  { %1001 = vmatpush3.msra.mxu1 %v746_v23  ;;  %964 = vmatprep.subr.mxu0 %v74_v24  ;;  %v428_v22 = vld [vmem:[%s1582_s2 + $0x28] sm:$0xff]  ;;  %v785_v23 = vld [vmem:[%s1582_s2 + $0xa0] sm:$0xff]  ;;  %v811_v37 = vld [vmem:[%s1582_s2 + $0x150] sm:$0xff] }
  0x1b   :  { %1002 = vmatprep.subr.mxu1 %v745_v25  ;;  %965 = vmatpush3.msra.mxu0 %v74_v24  ;;  %v427_v24 = vld [vmem:[%s1582_s2 + $0x20] sm:$0xff] }
  0x1c   :  { %1003 = vmatpush3.msra.mxu1 %v745_v25  ;;  %966 = vmatprep.subr.mxu0 %v73_v26  ;;  %v784_v25 = vld [vmem:[%s1582_s2 + $0x98] sm:$0xff] }
  0x1d   :  { %1004 = vmatprep.subr.mxu1 %v744_v27  ;;  %967 = vmatpush3.msra.mxu0 %v73_v26  ;;  %v426_v26 = vld [vmem:[%s1582_s2 + $0x18] sm:$0xff] }
  0x1e   :  { %1005 = vmatpush3.msra.mxu1 %v744_v27  ;;  %968 = vmatprep.subr.mxu0 %v72_v30  ;;  %v783_v27 = vld [vmem:[%s1582_s2 + $0x90] sm:$0xff] }
  0x1f   :  { %1006 = vmatprep.subr.mxu1 %v743_v31  ;;  %969 = vmatpush3.msra.mxu0 %v72_v30  ;;  %v425_v30 = vld [vmem:[%s1582_s2 + $0x10] sm:$0xff] }
  0x20   :  { %1007 = vmatpush3.msra.mxu1 %v743_v31  ;;  %970 = vmatprep.subr.mxu0 %v71_v34  ;;  %v782_v31 = vld [vmem:[%s1582_s2 + $0x88] sm:$0xff] }
  0x21   :  { %1008 = vmatprep.subr.mxu1 %v742_v35  ;;  %971 = vmatpush3.msra.mxu0 %v71_v34  ;;  %v423_v34 = vld [vmem:[%s1582_s2] sm:$0xff] }
  0x22   :  { %972 = vmatprep.mubr.msk.f32.mxu0 %vm1312_vm1, %v29_v32  ;;  %1009 = vmatpush3.msra.mxu1 %v742_v35  ;;  %v424_v32 = vld [vmem:[%s1582_s2 + $0x8] sm:$0xff]  ;;  %v816_v35 = vld [vmem:[%s1582_s2 + $0x178] sm:$0xff] }
  0x23   :  { %1010 = vmatprep.mubr.f32.mxu1 %v1285_v28  ;;  %973 = vmatmul.mubr.f32.vlgmr.msra.gmra.mxu0 %v31_v39 }
  0x24   :  { %1011 = vmatmul.mubr.f32.vlgmr.msra.gmra.mxu1 %v1290_v29  ;;  %1016 = vmatprep.subr.mxu0 %v777_v41 }
  0x25   :  { %975 = vmatprep.mubr.msk.f32.mxu0 %vm1312_vm1, %v32_v40  ;;  %1017 = vmatpush3.msra.mxu0 %v777_v41 }
  0x26   :  { %1013 = vmatprep.mubr.f32.mxu1 %v1309_v36  ;;  %1018 = vmatprep.subr.mxu0 %v776_v45 }
  0x27   :  { %1019 = vmatpush3.msra.mxu0 %v776_v45  ;;  %1054 = vmatprep.subr.mxu1 %v438_v2 }
  0x28   :  { %1014 = vmatmul.mubr.f32.gmra.mxu1 %v1319_v38  ;;  %1020 = vmatprep.subr.mxu0 %v775_v46 }
  0x29   :  { %976 = vmatmul.mubr.f32.gmra.mxu0 %v34_v47  ;;  %1055 = vmatpush3.msra.mxu1 %v438_v2 }
  0x2a   :  { %1021 = vmatpush3.msra.mxu0 %v775_v46  ;;  %1048 = vmatprep.mubr.f32.mxu0 %v44_v48  ;;  %v780_v48 = vld [vmem:[%s1583_s3] ss:$0 sm:$0xff] }
  0x2b   :  { %1022 = vmatprep.subr.mxu0 %v774_v49  ;;  %1056 = vmatprep.subr.mxu1 %v437_v4 }
  0x2c   :  { %1023 = vmatpush3.msra.mxu0 %v774_v49  ;;  %1057 = vmatpush3.msra.mxu1 %v437_v4 }
  0x2d   :  { %1024 = vmatprep.subr.mxu0 %v773_v50  ;;  %1058 = vmatprep.subr.mxu1 %v436_v6 }
  0x2e   :  { %1025 = vmatpush3.msra.mxu0 %v773_v50  ;;  %1059 = vmatpush3.msra.mxu1 %v436_v6 }
  0x2f   :  { %1026 = vmatprep.subr.mxu0 %v772_v51  ;;  %1060 = vmatprep.subr.mxu1 %v435_v8 }
  0x30   :  { %1027 = vmatpush3.msra.mxu0 %v772_v51  ;;  %1061 = vmatpush3.msra.mxu1 %v435_v8 }
  0x31   :  { %1028 = vmatprep.subr.mxu0 %v771_v52  ;;  %1062 = vmatprep.subr.mxu1 %v434_v10 }
  0x32   :  { %1029 = vmatpush3.msra.mxu0 %v771_v52  ;;  %1063 = vmatpush3.msra.mxu1 %v434_v10  ;;  %v814_v10 = vld [vmem:[%s1582_s2 + $0x168] sm:$0xff] }
  0x33   :  { %1030 = vmatprep.subr.mxu0 %v770_v53  ;;  %1064 = vmatprep.subr.mxu1 %v433_v12 }
  0x34   :  { %1031 = vmatpush3.msra.mxu0 %v770_v53  ;;  %1065 = vmatpush3.msra.mxu1 %v433_v12 }
  0x35   :  { %1032 = vmatprep.subr.mxu0 %v769_v54  ;;  %1066 = vmatprep.subr.mxu1 %v432_v14 }
  0x36   :  { %1033 = vmatpush3.msra.mxu0 %v769_v54  ;;  %1067 = vmatpush3.msra.mxu1 %v432_v14  ;;  %v813_v14 = vld [vmem:[%s1582_s2 + $0x160] sm:$0xff] }
  0x37   :  { %1034 = vmatprep.subr.mxu0 %v768_v55  ;;  %1068 = vmatprep.subr.mxu1 %v431_v16 }
  0x38   :  { %1035 = vmatpush3.msra.mxu0 %v768_v55  ;;  %1069 = vmatpush3.msra.mxu1 %v431_v16  ;;  %v812_v16 = vld [vmem:[%s1582_s2 + $0x158] sm:$0xff] }
  0x39   :  { %1036 = vmatprep.subr.mxu0 %v767_v56  ;;  %1070 = vmatprep.subr.mxu1 %v430_v18 }
  0x3a   :  { %1037 = vmatpush3.msra.mxu0 %v767_v56  ;;  %1071 = vmatpush3.msra.mxu1 %v430_v18  ;;  %v809_v18 = vld [vmem:[%s1582_s2 + $0x140] sm:$0xff] }
  0x3b   :  { %1038 = vmatprep.subr.mxu0 %v766_v57  ;;  %1072 = vmatprep.subr.mxu1 %v429_v20 }
  0x3c   :  { %1039 = vmatpush3.msra.mxu0 %v766_v57  ;;  %1073 = vmatpush3.msra.mxu1 %v429_v20  ;;  %v807_v20 = vld [vmem:[%s1582_s2 + $0x130] sm:$0xff] }
  0x3d   :  { %1040 = vmatprep.subr.mxu0 %v765_v58  ;;  %1074 = vmatprep.subr.mxu1 %v428_v22 }
  0x3e   :  { %1041 = vmatpush3.msra.mxu0 %v765_v58  ;;  %1075 = vmatpush3.msra.mxu1 %v428_v22  ;;  %v805_v22 = vld [vmem:[%s1582_s2 + $0x120] sm:$0xff] }
  0x3f   :  { %1042 = vmatprep.subr.mxu0 %v764_v59  ;;  %1076 = vmatprep.subr.mxu1 %v427_v24 }
  0x40   :  { %1043 = vmatpush3.msra.mxu0 %v764_v59  ;;  %1077 = vmatpush3.msra.mxu1 %v427_v24  ;;  %v803_v24 = vld [vmem:[%s1582_s2 + $0x110] sm:$0xff] }
  0x41   :  { %1044 = vmatprep.subr.mxu0 %v763_v60  ;;  %1078 = vmatprep.subr.mxu1 %v426_v26 }
  0x42   :  { %1045 = vmatpush3.msra.mxu0 %v763_v60  ;;  %1079 = vmatpush3.msra.mxu1 %v426_v26  ;;  %v801_v26 = vld [vmem:[%s1582_s2 + $0x100] sm:$0xff] }
  0x43   :  { %1046 = vmatprep.subr.mxu0 %v762_v63  ;;  %1080 = vmatprep.subr.mxu1 %v425_v30 }
  0x44   :  { %1047 = vmatpush3.msra.mxu0 %v762_v63  ;;  %1081 = vmatpush3.msra.mxu1 %v425_v30 }
  0x45   :  { %1049 = vmatmul.mubr.msk.f32.vlgmr.msra.gmra.mxu0 %vm41_vm2, %v43_v44  ;;  %1092 = vmatprep.subr.mxu0 %v796_v1 }
  0x46   :  { %1051 = vmatprep.mubr.f32.mxu0 %v47_v0  ;;  %1093 = vmatpush3.msra.mxu0 %v796_v1 }
  0x47   :  { %1094 = vmatprep.subr.mxu0 %v795_v3  ;;  %1082 = vmatprep.subr.mxu1 %v424_v32 }
  0x48   :  { %1095 = vmatpush3.msra.mxu0 %v795_v3  ;;  %1083 = vmatpush3.msra.mxu1 %v424_v32 }
  0x49   :  { %1052 = vmatmul.mubr.msk.f32.gmra.mxu0 %vm41_vm2, %v46_v62  ;;  %1096 = vmatprep.subr.mxu0 %v794_v5 }
  0x4a   :  { %1097 = vmatpush3.msra.mxu0 %v794_v5  ;;  %1084 = vmatprep.subr.mxu1 %v423_v34 }
  0x4b   :  { %1098 = vmatprep.subr.mxu0 %v793_v7  ;;  %1085 = vmatpush3.msra.mxu1 %v423_v34 }
  0x4c   :  { %1099 = vmatpush3.msra.mxu0 %v793_v7  ;;  %1130 = vmatprep.subr.mxu1 %v816_v35  ;;  %v815_v7 = vld [vmem:[%s1582_s2 + $0x170] sm:$0xff] }
  0x4d   :  { %1100 = vmatprep.subr.mxu0 %v792_v9 }
  0x4e   :  { %1101 = vmatpush3.msra.mxu0 %v792_v9 }
  0x4f   :  { %1102 = vmatprep.subr.mxu0 %v791_v11 }
  0x50   :  { %1103 = vmatpush3.msra.mxu0 %v791_v11 }
  0x51   :  { %1104 = vmatprep.subr.mxu0 %v790_v13 }
  0x52   :  { %1105 = vmatpush3.msra.mxu0 %v790_v13 }
  0x53   :  { %1106 = vmatprep.subr.mxu0 %v789_v15 }
  0x54   :  { %1107 = vmatpush3.msra.mxu0 %v789_v15 }
  0x55   :  { %1108 = vmatprep.subr.mxu0 %v788_v17 }
  0x56   :  { %1109 = vmatpush3.msra.mxu0 %v788_v17  ;;  %v810_v17 = vld [vmem:[%s1582_s2 + $0x148] sm:$0xff] }
  0x57   :  { %1110 = vmatprep.subr.mxu0 %v787_v19 }
  0x58   :  { %1111 = vmatpush3.msra.mxu0 %v787_v19  ;;  %v808_v19 = vld [vmem:[%s1582_s2 + $0x138] sm:$0xff] }
  0x59   :  { %1112 = vmatprep.subr.mxu0 %v786_v21 }
  0x5a   :  { %1113 = vmatpush3.msra.mxu0 %v786_v21  ;;  %v806_v21 = vld [vmem:[%s1582_s2 + $0x128] sm:$0xff] }
  0x5b   :  { %1114 = vmatprep.subr.mxu0 %v785_v23 }
  0x5c   :  { %1115 = vmatpush3.msra.mxu0 %v785_v23  ;;  %v804_v23 = vld [vmem:[%s1582_s2 + $0x118] sm:$0xff] }
  0x5d   :  { %1116 = vmatprep.subr.mxu0 %v784_v25 }
  0x5e   :  { %1117 = vmatpush3.msra.mxu0 %v784_v25  ;;  %v802_v25 = vld [vmem:[%s1582_s2 + $0x108] sm:$0xff] }
  0x5f   :  { %1118 = vmatprep.subr.mxu0 %v783_v27 }
  0x60   :  { %1119 = vmatpush3.msra.mxu0 %v783_v27 }
  0x61   :  { %1120 = vmatprep.subr.mxu0 %v782_v31 }
  0x62   :  { %1121 = vmatpush3.msra.mxu0 %v782_v31 }
  0x63   :  { %1122 = vmatprep.subr.mxu0 %v781_v33 }
  0x64   :  { %1123 = vmatpush3.msra.mxu0 %v781_v33 }
  0xe3   :  { %v974_v39 = vpop.f32.mrf.mxu0 }
  0xe4   :  { %v1012_v40 = vpop.f32.mrf.mxu1 }
  0xe5   :  { %v153_v41 = vpop.f32.mrf.mxu0  ;;  %v244_v46 = vadd.f32 %v1012_v40, %v974_v39 }
  0xe6   :  { %v238_v43 = vpop.f32.mrf.mxu1 }
  0xe7   :  { %v239_v49 = vadd.f32 %v238_v43, %v153_v41 }
  0xe8   :  { %v1015_v44 = vpop.f32.mrf.mxu1 }
  0xe9   :  { %v977_v42 = vpop.f32.mrf.mxu0 }
  0xea   :  { %v248_v51 = vpop.f32.mrf.mxu1  ;;  %v254_v53 = vadd.f32 %v1015_v44, %v977_v42  ;;  %v819_v44 = vld [vmem:[%s1584_s4] ss:$0 sm:$0xff] }
  0xeb   :  { %v163_v45 = vpop.f32.mrf.mxu0 }
  0xec   :  { %v249_v57 = vadd.f32 %v248_v51, %v163_v45 }
 0x105   :  { %v1050_v47 = vpop.f32.mrf.mxu0 }
 0x106   :  { %v360_v50 = vadd.f32 %v1050_v47, %v244_v46 }
 0x107   :  { %v340_v52 = vpop.f32.mrf.mxu0 }
 0x108   :  { %v371_v54 = vadd.f32 %v780_v48, %v360_v50  ;;  %v359_v55 = vadd.f32 %v340_v52, %v239_v49 }
 0x109   :  { %v1053_v56 = vpop.f32.mrf.mxu0 }
 0x10a   :  { %v1491_v58 = vmax.f32 %v371_v54, 0.0  ;;  %v370_v59 = vadd.f32 %v780_v48, %v359_v55  ;;  %v362_v60 = vadd.f32 %v1053_v56, %v254_v53 }
 0x10b   :  { %v350_v61 = vpop.f32.mrf.mxu0 }
 0x10c   :  { %v374_v62 = vmax.f32 %v370_v59, 0.0  ;;  %v373_v63 = vadd.f32 %v780_v48, %v362_v60  ;;  %v361_v0 = vadd.f32 %v350_v61, %v249_v57  ;;  %v383_v1 = vrot.slane %v1491_v58, 7 }
 0x10d   :  { %v395_v12 = vrot.slane %v1491_v58, 1 }
 0x10e   :  { %v1494_v2 = vmax.f32 %v373_v63, 0.0  ;;  %v372_v3 = vadd.f32 %v780_v48, %v361_v0  ;;  %1124 = vmatprep.mubr.f32.mxu0 %v374_v62  ;;  %v382_v4 = vrot.slane %v374_v62, 7  ;;  %v394_v8 = vrot.slane %v374_v62, 1 }
 0x10f   :  { %1125 = vmatmul.mubr.f32.vlgmr.msra.gmra.mxu0 %v1491_v58 }
 0x110   :  { %v1497_v5 = vmax.f32 %v372_v3, 0.0  ;;  %1086 = vmatprep.mubr.msk.f32.mxu1 %vm1312_vm1, %v382_v4  ;;  %v384_v6 = vsel %vm28_vm0, %v382_v4, %v383_v1  ;;  %v386_v11 = vrot.slane %v1494_v2, 7  ;;  %v396_v15 = vsel %vm41_vm2, %v394_v8, %v395_v12 }
 0x111   :  { %1087 = vmatmul.mubr.f32.vlgmr.msra.gmra.mxu1 %v384_v6  ;;  %v398_v30 = vrot.slane %v1494_v2, 1 }
 0x112   :  { %1131 = vmatpush3.msra.mxu1 %v816_v35  ;;  %1127 = vmatprep.mubr.f32.mxu0 %v1497_v5  ;;  %v385_v9 = vrot.slane %v1497_v5, 7  ;;  %v397_v27 = vrot.slane %v1497_v5, 1 }
 0x113   :  { %1132 = vmatprep.subr.mxu1 %v815_v7  ;;  %1128 = vmatmul.mubr.f32.gmra.mxu0 %v1494_v2 }
 0x114   :  { %1133 = vmatpush3.msra.mxu1 %v815_v7  ;;  %1089 = vmatprep.mubr.msk.f32.mxu1 %vm1312_vm1, %v385_v9  ;;  %v387_v13 = vsel %vm28_vm0, %v385_v9, %v386_v11  ;;  %v399_v31 = vsel %vm41_vm2, %v397_v27, %v398_v30 }
 0x115   :  { %1134 = vmatprep.subr.mxu1 %v814_v10  ;;  %1090 = vmatmul.mubr.f32.gmra.mxu1 %v387_v13 }
 0x116   :  { %1135 = vmatpush3.msra.mxu1 %v814_v10  ;;  %1162 = vmatprep.mubr.f32.mxu1 %v396_v15 }
 0x117   :  { %1136 = vmatprep.subr.mxu1 %v813_v14 }
 0x118   :  { %1137 = vmatpush3.msra.mxu1 %v813_v14 }
 0x119   :  { %1138 = vmatprep.subr.mxu1 %v812_v16 }
 0x11a   :  { %1139 = vmatpush3.msra.mxu1 %v812_v16 }
 0x11b   :  { %1140 = vmatprep.subr.mxu1 %v811_v37 }
 0x11c   :  { %1141 = vmatpush3.msra.mxu1 %v811_v37 }
 0x11d   :  { %1142 = vmatprep.subr.mxu1 %v810_v17 }
 0x11e   :  { %1143 = vmatpush3.msra.mxu1 %v810_v17 }
 0x11f   :  { %1144 = vmatprep.subr.mxu1 %v809_v18 }
 0x120   :  { %1145 = vmatpush3.msra.mxu1 %v809_v18 }
 0x121   :  { %1146 = vmatprep.subr.mxu1 %v808_v19 }
 0x122   :  { %1147 = vmatpush3.msra.mxu1 %v808_v19 }
 0x123   :  { %1148 = vmatprep.subr.mxu1 %v807_v20 }
 0x124   :  { %1149 = vmatpush3.msra.mxu1 %v807_v20 }
 0x125   :  { %1150 = vmatprep.subr.mxu1 %v806_v21 }
 0x126   :  { %1151 = vmatpush3.msra.mxu1 %v806_v21 }
 0x127   :  { %1152 = vmatprep.subr.mxu1 %v805_v22 }
 0x128   :  { %1153 = vmatpush3.msra.mxu1 %v805_v22 }
 0x129   :  { %1154 = vmatprep.subr.mxu1 %v804_v23 }
 0x12a   :  { %1155 = vmatpush3.msra.mxu1 %v804_v23 }
 0x12b   :  { %1156 = vmatprep.subr.mxu1 %v803_v24 }
 0x12c   :  { %1157 = vmatpush3.msra.mxu1 %v803_v24 }
 0x12d   :  { %1158 = vmatprep.subr.mxu1 %v802_v25 }
 0x12e   :  { %1159 = vmatpush3.msra.mxu1 %v802_v25 }
 0x12f   :  { %1160 = vmatprep.subr.mxu1 %v801_v26 }
 0x130   :  { %1161 = vmatpush3.msra.mxu1 %v801_v26 }
 0x131   :  { %1163 = vmatmul.mubr.msk.f32.vlgmr.msra.gmra.mxu1 %vm41_vm2, %v395_v12 }
 0x132   :  { %1165 = vmatprep.mubr.f32.mxu1 %v399_v31 }
 0x135   :  { %1166 = vmatmul.mubr.msk.f32.gmra.mxu1 %vm41_vm2, %v398_v30 }
 0x1cf   :  { %v1126_v34 = vpop.f32.mrf.mxu0 }
 0x1d1   :  { %v1088_v32 = vpop.f32.mrf.mxu1  ;;  %v590_v39 = vpop.f32.mrf.mxu0 }
 0x1d2   :  { %v596_v41 = vadd.f32 %v1126_v34, %v1088_v32 }
 0x1d3   :  { %v505_v33 = vpop.f32.mrf.mxu1  ;;  %v1129_v42 = vpop.f32.mrf.mxu0 }
 0x1d4   :  { %v591_v45 = vadd.f32 %v590_v39, %v505_v33 }
 0x1d5   :  { %v1091_v35 = vpop.f32.mrf.mxu1  ;;  %v600_v51 = vpop.f32.mrf.mxu0 }
 0x1d6   :  { %v606_v48 = vadd.f32 %v1129_v42, %v1091_v35 }
 0x1d7   :  { %v515_v40 = vpop.f32.mrf.mxu1 }
 0x1d8   :  { %v601_v53 = vadd.f32 %v600_v51, %v515_v40 }
 0x1f1   :  { %v1164_v43 = vpop.f32.mrf.mxu1 }
 0x1f2   :  { %v712_v46 = vadd.f32 %v1164_v43, %v596_v41 }
 0x1f3   :  { %v692_v47 = vpop.f32.mrf.mxu1 }
 0x1f4   :  { %v723_v49 = vadd.f32 %v819_v44, %v712_v46  ;;  %v711_v50 = vadd.f32 %v692_v47, %v591_v45 }
 0x1f5   :  { %v1167_v52 = vpop.f32.mrf.mxu1 }
 0x1f6   :  { %v727_v54 = vadd.f32 %v723_v49, %v1290_v29  ;;  %v722_v55 = vadd.f32 %v819_v44, %v711_v50  ;;  %v714_v56 = vadd.f32 %v1167_v52, %v606_v48 }
 0x1f7   :  { %v702_v57 = vpop.f32.mrf.mxu1 }
 0x1f8   :  { %v731_v58 = vmax.f32 %v727_v54, 0.0  ;;  %v726_v59 = vadd.f32 %v722_v55, %v1285_v28  ;;  %v725_v60 = vadd.f32 %v819_v44, %v714_v56  ;;  %v713_v61 = vadd.f32 %v702_v57, %v601_v53 }
 0x1fa   :  { %735 = vst [vmem:[%s1585_s5 + $0x8] sm:$0xff] %v731_v58  ;;  %v730_v62 = vmax.f32 %v726_v59, 0.0  ;;  %v729_v63 = vadd.f32 %v725_v60, %v1319_v38  ;;  %v724_v0 = vadd.f32 %v819_v44, %v713_v61 }
 0x1fc   :  { %734 = vst [vmem:[%s1585_s5] sm:$0xff] %v730_v62  ;;  %v733_v29 = vmax.f32 %v729_v63, 0.0  ;;  %v728_v1 = vadd.f32 %v724_v0, %v1309_v36 }
 0x1fe   :  { %737 = vst [vmem:[%s1585_s5 + $0x18] sm:$0xff] %v733_v29  ;;  %v732_v28 = vmax.f32 %v728_v1, 0.0 }
 0x200   :  { %736 = vst [vmem:[%s1585_s5 + $0x10] sm:$0xff] %v732_v28 }

</bundles_post_ra>
